<compile_context>
chip_gen: v7x
topology: tpu7x:2x2x1
jax: 0.10.0
libtpu: 0.0.40
codegen_flags: <defaults>
</compile_context>

<pallas_src>
import functools

import jax
import jax.numpy as jnp
import numpy as np
from jax.experimental import pallas as pl
from jax.experimental.pallas import tpu as pltpu

K_TAPS = 5  # Conv1d kernel_size in the PyTorch module


# ----------------------------- kernel -----------------------------
def _im2col_conv(a, w, b, taps, mm_dtype):
    """Stride-1 'valid' conv along the rows of a 2-D slab as ONE MXU matmul.

    a: (rows_in, C) activation slab (already ReLU'd)
    w: (taps*C, C_out) folded weights (mm_dtype), b: (1, C_out) f32
    -> (rows_in - taps + 1, C_out) float32
    """
    rows = a.shape[0] - (taps - 1)
    a = a.astype(mm_dtype)
    # TODO(synk): benchmark the per-tap accumulation form (acc += dot(a[t:t+rows], w_t)) against
    # this single im2col matmul per TPU generation (v7x's MRB makes the multi-dot form cheap).
    cols = jnp.concatenate([a[t:t + rows, :] for t in range(taps)], axis=-1)
    return jnp.dot(cols, w, preferred_element_type=jnp.float32) + b


def _fused_cnn_kernel(x_ref, w1_ref, b1_ref, w2_ref, b2_ref, w3_ref, b3_ref, o_ref,
                      *, a1, kq, mm_dtype):
    # ReLU on the bf16 input slab (identical to ReLU-then-cast since ReLU commutes with the cast).
    xr = jnp.maximum(x_ref[...], 0)
    # Folded layer 1 (original stride-1 conv, k-folded so layer 2 becomes dense).
    z = _im2col_conv(xr, w1_ref[...], b1_ref[...], a1, mm_dtype)
    # Folded layer 2 (the original stride-k conv, now a dense stride-1 conv with kq taps).
    y2 = _im2col_conv(jnp.maximum(z, 0.0), w2_ref[...], b2_ref[...], kq, mm_dtype)
    # Layer 3: plain stride-1 conv.
    y3 = _im2col_conv(jnp.maximum(y2, 0.0), w3_ref[...], b3_ref[...], K_TAPS, mm_dtype)
    # The last (a1-1)+(kq-1)+(K-1) rows of the block are per-batch tail padding; leave them unwritten
    # (the wrapper slices them off).
    o_ref[: y3.shape[0], :] = y3.astype(o_ref.dtype)


# ------------------------ wrapper-side folding ------------------------
def _fold_input(x, k, l_f):
    """(B, L, C_in) -> (B, l_f, k*C_in). Pure layout plumbing done by XLA outside the kernel.

    Trailing rows are zero-padded / silently truncated to l_f*k; this is arithmetically correct
    for VALID convolutions only."""
    B, L, C = x.shape
    target = l_f * k
    if target > L:
        x = jnp.concatenate([x, jnp.zeros((B, target - L, C), x.dtype)], axis=1)
    elif target < L:
        x = x[:, :target, :]
    return x.reshape(B, l_f, k * C)


def _fold_w1(w1, k, mm_dtype):
    """(K, C_in, M) -> (a1*k*C_in, k*M).

    W1f[a, q*C_in+c, p*M+m] = w1[a*k+q-p, c, m] (zero if tap out of range), so the folded layer-1
    output z[u, p*M+m] == y1[u*k+p, m] using only dense stride-1 reads of the folded input."""
    K, Cin, M = w1.shape
    a1 = (k - 1 + K - 1) // k + 1
    zero = jnp.zeros((Cin, M), w1.dtype)
    taps = []
    for a in range(a1):
        col_blocks = []
        for p in range(k):          # output phase -> column block
            row_blocks = []
            for q in range(k):      # input phase  -> row block
                t = a * k + q - p
                row_blocks.append(w1[t] if 0 <= t < K else zero)
            col_blocks.append(jnp.concatenate(row_blocks, axis=0))   # (k*C_in, M)
        taps.append(jnp.concatenate(col_blocks, axis=1))             # (k*C_in, k*M)
    return jnp.concatenate(taps, axis=0).astype(mm_dtype)            # (a1*k*C_in, k*M)


def _fold_w2(w2, k, mm_dtype):
    """(K, M, C2) -> (kq*k*M, C2): taps regrouped k at a time (zero-padded) so the stride-k conv
    over y1 becomes a dense stride-1 conv over the k-folded z."""
    K, M, C2 = w2.shape
    kq = -(-K // k)
    pad = kq * k - K
    if pad:
        w2 = jnp.concatenate([w2, jnp.zeros((pad, M, C2), w2.dtype)], axis=0)
    return w2.reshape(kq * k * M, C2).astype(mm_dtype)


def _fold_w3(w3, mm_dtype):
    K, C2, C3 = w3.shape
    return w3.reshape(K * C2, C3).astype(mm_dtype)


# ----------------------------- helpers -----------------------------
def _pick_batch_tile(B, pitch, target_rows=256):
    """Batch elements per grid step: fill ~target_rows MXU rows per matmul, but keep >= 2 grid
    steps when B >= 2 so both of v7x's TensorCores get work via the 'parallel' grid axis."""
    bt = max(1, target_rows // max(pitch, 1))
    if B >= 2:
        bt = min(bt, -(-B // 2))
    return max(1, min(bt, B))


def _const_index_map_2d(bi):
    return (0, 0)


def _const_spec(shape, single_buffer):
    """Full-array BlockSpec for weights/biases whose block never changes across the grid."""
    if single_buffer:
        # Single-buffer the constant operands: halves their VMEM footprint at zero cost.
        return pl.BlockSpec(shape, _const_index_map_2d, pipeline_mode=pl.Buffered(1))
    return pl.BlockSpec(shape, _const_index_map_2d)


# ----------------------------- forward -----------------------------
def cnn_connector_forward(x, params, *, k, matmul_dtype=jnp.bfloat16, batch_tile=None):
    """Equivalent of CNNConnector.forward: x (B, L, in_ch) -> (B, L3, out_ch)."""
    B, L, Cin = x.shape
    K = K_TAPS
    M = params["w1"].shape[-1]
    C2 = params["w2"].shape[-1]
    C3 = params["w3"].shape[-1]

    l1 = L - K + 1
    assert l1 >= K, "input too short for CNNConnector"
    l2 = (l1 - K) // k + 1
    l3 = l2 - K + 1
    assert l3 >= 1, "input too short for CNNConnector"

    kq = -(-K // k)                    # taps of the folded stride-k layer
    a1 = (k - 1 + K - 1) // k + 1      # taps of the folded first layer
    l_z = l2 + kq - 1                  # folded layer-1 rows needed per batch element
    l_f = l_z + a1 - 1                 # folded input rows needed per batch element

    # Per-batch row pitch inside the stacked 2-D slab; multiple of 8 so all row-blocked BlockSpecs
    # satisfy the TPU (8, 128) tiling rule.
    pitch = -(-l_f // 8) * 8
    bt = batch_tile or _pick_batch_tile(B, pitch)
    n_blocks = -(-B // bt)
    b_pad = n_blocks * bt

    # Fold + cast in the wrapper (free XLA layout plumbing; bf16 halves activation HBM traffic).
    xf = _fold_input(x.astype(matmul_dtype), k, l_f)                      # (B, l_f, k*Cin)
    xf = jnp.pad(xf, ((0, b_pad - B), (0, pitch - l_f), (0, 0)))          # batch + pitch padding
    xf2 = xf.reshape(b_pad * pitch, k * Cin)                              # 2-D batch-stacked slab

    w1f = _fold_w1(params["w1"], k, matmul_dtype)                         # (a1*k*Cin, k*M)
    b1f = jnp.tile(params["b1"], (1, k))                                  # (1, k*M)
    w2f = _fold_w2(params["w2"], k, matmul_dtype)                         # (kq*k*M, C2)
    w3f = _fold_w3(params["w3"], matmul_dtype)                            # (K*C2, C3)
    b2 = params["b2"]
    b3 = params["b3"]

    kernel = functools.partial(_fused_cnn_kernel, a1=a1, kq=kq, mm_dtype=matmul_dtype)

    rows1 = bt * pitch - (a1 - 1)
    rows2 = rows1 - (kq - 1)
    rows3 = rows2 - (K - 1)
    flops = 2 * n_blocks * (rows1 * (a1 * k * Cin) * (k * M)
                            + rows2 * (kq * k * M) * C2
                            + rows3 * (K * C2) * C3)
    bytes_accessed = (int(xf2.size) * xf2.dtype.itemsize
                      + sum(int(a.size) * a.dtype.itemsize for a in (w1f, b1f, w2f, b2, w3f, b3))
                      + b_pad * pitch * C3 * 4)
    cost = pl.CostEstimate(flops=int(flops), transcendentals=0, bytes_accessed=int(bytes_accessed))

    def run(single_buffer_weights):
        return pl.pallas_call(
            kernel,
            out_shape=jax.ShapeDtypeStruct((b_pad * pitch, C3), jnp.float32),
            grid=(n_blocks,),
            in_specs=[
                pl.BlockSpec((bt * pitch, k * Cin), lambda bi: (bi, 0)),   # per-step activation slab
                _const_spec(w1f.shape, single_buffer_weights),
                _const_spec(b1f.shape, single_buffer_weights),
                _const_spec(w2f.shape, single_buffer_weights),
                _const_spec(b2.shape, single_buffer_weights),
                _const_spec(w3f.shape, single_buffer_weights),
                _const_spec(b3.shape, single_buffer_weights),
            ],
            out_specs=pl.BlockSpec((bt * pitch, C3), lambda bi: (bi, 0)),
            compiler_params=pltpu.CompilerParams(
                dimension_semantics=("parallel",),     # megacore / 2-TC sharding over batch blocks
                vmem_limit_bytes=48 * 1024 * 1024,     # headroom under v7x's 64 MiB physical VMEM
            ),
            cost_estimate=cost,
        )(xf2, w1f, b1f, w2f, b2, w3f, b3)

    try:
        out2 = run(True)
    except Exception:
        # pipeline_mode=pl.Buffered(1) not supported by this jax/Mosaic build: default buffering.
        out2 = run(False)

    out = out2.reshape(b_pad, pitch, C3)[:B, :l3, :]
    return out.astype(x.dtype)


# ----------------------------- params -----------------------------
def init_cnn_connector_params(key, in_channels, out_channels):
    """Deterministic synthetic params. Weight layout: (K, C_in, C_out)."""
    mid = out_channels // 2
    K = K_TAPS
    k1, k2, k3, k4, k5, k6 = jax.random.split(key, 6)
    scale = 0.05
    return {
        "w1": scale * jax.random.normal(k1, (K, in_channels, mid), jnp.float32),
        "b1": scale * jax.random.normal(k2, (1, mid), jnp.float32),
        "w2": scale * jax.random.normal(k3, (K, mid, out_channels), jnp.float32),
        "b2": scale * jax.random.normal(k4, (1, out_channels), jnp.float32),
        "w3": scale * jax.random.normal(k5, (K, out_channels, out_channels), jnp.float32),
        "b3": scale * jax.random.normal(k6, (1, out_channels), jnp.float32),
    }


# ---------------- pure-JAX reference for validation ----------------
def _ref_layer(x, w, b, stride):
    x = jax.nn.relu(x)
    y = jax.lax.conv_general_dilated(
        x, w, window_strides=(stride,), padding="VALID",
        dimension_numbers=("NHC", "HIO", "NHC"),
    )
    return y + b


def _ref_forward(x, params, *, k):
    y = _ref_layer(x, params["w1"], params["b1"], 1)
    y = _ref_layer(y, params["w2"], params["b2"], k)
    y = _ref_layer(y, params["w3"], params["b3"], 1)
    return y


if __name__ == "__main__":
    B, L = 2, 32
    in_channels, out_channels, k = 32, 32, 2

    key = jax.random.PRNGKey(0)
    kx, kp = jax.random.split(key)
    x = jax.random.normal(kx, (B, L, in_channels), jnp.float32)
    params = init_cnn_connector_params(kp, in_channels, out_channels)

    out = cnn_connector_forward(x, params, k=k)
    out = jax.block_until_ready(out)

    ref = jax.block_until_ready(_ref_forward(x, params, k=k))
    assert out.shape == ref.shape, (out.shape, ref.shape)
    # bf16 MXU operands (f32 accumulation) across three chained matmuls -> loosened tolerance.
    np.testing.assert_allclose(np.asarray(out), np.asarray(ref), rtol=2e-2, atol=2e-2)

    print("KERNEL_OK")
</pallas_src>

<mosaic_0001>
module attributes {stable_mosaic.version = 11 : i64} {
  func.func @_fused_cnn_kernel(%arg0: i32, %arg1: memref<16x64xbf16, #tpu.memory_space<vmem>>, %arg2: memref<192x32xbf16, #tpu.memory_space<vmem>>, %arg3: memref<1x32xf32, #tpu.memory_space<vmem>>, %arg4: memref<96x32xbf16, #tpu.memory_space<vmem>>, %arg5: memref<1x32xf32, #tpu.memory_space<vmem>>, %arg6: memref<160x32xbf16, #tpu.memory_space<vmem>>, %arg7: memref<1x32xf32, #tpu.memory_space<vmem>>, %arg8: memref<16x32xf32, #tpu.memory_space<vmem>>) attributes {dimension_semantics = [#tpu.dimension_semantics<parallel>], iteration_bounds = array<i64: 2>, scalar_prefetch = 0 : i64, scratch_operands = 0 : i64, tpu.core_type = #tpu.core_type<tc>, window_params = [{transform_indices = @transform_0, window_bounds = array<i64: 16, 64>}, {pipeline_mode = #tpu.pipeline_mode<synchronous>, transform_indices = @transform_1, window_bounds = array<i64: 192, 32>}, {pipeline_mode = #tpu.pipeline_mode<synchronous>, transform_indices = @transform_2, window_bounds = array<i64: 1, 32>}, {pipeline_mode = #tpu.pipeline_mode<synchronous>, transform_indices = @transform_3, window_bounds = array<i64: 96, 32>}, {pipeline_mode = #tpu.pipeline_mode<synchronous>, transform_indices = @transform_4, window_bounds = array<i64: 1, 32>}, {pipeline_mode = #tpu.pipeline_mode<synchronous>, transform_indices = @transform_5, window_bounds = array<i64: 160, 32>}, {pipeline_mode = #tpu.pipeline_mode<synchronous>, transform_indices = @transform_6, window_bounds = array<i64: 1, 32>}, {transform_indices = @transform_7, window_bounds = array<i64: 16, 32>}]} {
    %c0 = arith.constant 0 : index
    %c0_0 = arith.constant 0 : index
    %0 = vector.load %arg1[%c0, %c0_0] : memref<16x64xbf16, #tpu.memory_space<vmem>>, vector<16x64xbf16>
    %cst = arith.constant 0.000000e+00 : bf16
    %1 = vector.broadcast %cst : bf16 to vector<16x64xbf16>
    %2 = arith.maximumf %0, %1 : vector<16x64xbf16>
    %c0_1 = arith.constant 0 : index
    %c0_2 = arith.constant 0 : index
    %3 = vector.load %arg2[%c0_1, %c0_2] : memref<192x32xbf16, #tpu.memory_space<vmem>>, vector<192x32xbf16>
    %c0_3 = arith.constant 0 : index
    %c0_4 = arith.constant 0 : index
    %4 = vector.load %arg3[%c0_3, %c0_4] : memref<1x32xf32, #tpu.memory_space<vmem>>, vector<1x32xf32>
    %5 = vector.extract_strided_slice %2 {offsets = [0, 0], sizes = [14, 64], strides = [1, 1]} : vector<16x64xbf16> to vector<14x64xbf16>
    %6 = vector.extract_strided_slice %2 {offsets = [1, 0], sizes = [14, 64], strides = [1, 1]} : vector<16x64xbf16> to vector<14x64xbf16>
    %7 = vector.extract_strided_slice %2 {offsets = [2, 0], sizes = [14, 64], strides = [1, 1]} : vector<16x64xbf16> to vector<14x64xbf16>
    %8 = tpu.concatenate %5, %6, %7 in 1 : vector<14x64xbf16>, vector<14x64xbf16>, vector<14x64xbf16> -> vector<14x192xbf16>
    %cst_5 = arith.constant dense<0.000000e+00> : vector<14x32xf32>
    %9 = tpu.matmul %8, %3, %cst_5 {dimension_numbers = #tpu.dot_dimension_numbers<[1], [0], [0], [1], [0, 0, 1, 1], [], []>} : vector<14x192xbf16>, vector<192x32xbf16>, vector<14x32xf32> -> vector<14x32xf32>
    %10 = vector.broadcast %4 : vector<1x32xf32> to vector<14x32xf32>
    %11 = arith.addf %9, %10 : vector<14x32xf32>
    %cst_6 = arith.constant 0.000000e+00 : f32
    %12 = vector.broadcast %cst_6 : f32 to vector<14x32xf32>
    %13 = arith.maximumf %11, %12 : vector<14x32xf32>
    %c0_7 = arith.constant 0 : index
    %c0_8 = arith.constant 0 : index
    %14 = vector.load %arg4[%c0_7, %c0_8] : memref<96x32xbf16, #tpu.memory_space<vmem>>, vector<96x32xbf16>
    %c0_9 = arith.constant 0 : index
    %c0_10 = arith.constant 0 : index
    %15 = vector.load %arg5[%c0_9, %c0_10] : memref<1x32xf32, #tpu.memory_space<vmem>>, vector<1x32xf32>
    %16 = arith.truncf %13 : vector<14x32xf32> to vector<14x32xbf16>
    %17 = vector.extract_strided_slice %16 {offsets = [0, 0], sizes = [12, 32], strides = [1, 1]} : vector<14x32xbf16> to vector<12x32xbf16>
    %18 = vector.extract_strided_slice %16 {offsets = [1, 0], sizes = [12, 32], strides = [1, 1]} : vector<14x32xbf16> to vector<12x32xbf16>
    %19 = vector.extract_strided_slice %16 {offsets = [2, 0], sizes = [12, 32], strides = [1, 1]} : vector<14x32xbf16> to vector<12x32xbf16>
    %20 = tpu.concatenate %17, %18, %19 in 1 : vector<12x32xbf16>, vector<12x32xbf16>, vector<12x32xbf16> -> vector<12x96xbf16>
    %cst_11 = arith.constant dense<0.000000e+00> : vector<12x32xf32>
    %21 = tpu.matmul %20, %14, %cst_11 {dimension_numbers = #tpu.dot_dimension_numbers<[1], [0], [0], [1], [0, 0, 1, 1], [], []>} : vector<12x96xbf16>, vector<96x32xbf16>, vector<12x32xf32> -> vector<12x32xf32>
    %22 = vector.broadcast %15 : vector<1x32xf32> to vector<12x32xf32>
    %23 = arith.addf %21, %22 : vector<12x32xf32>
    %cst_12 = arith.constant 0.000000e+00 : f32
    %24 = vector.broadcast %cst_12 : f32 to vector<12x32xf32>
    %25 = arith.maximumf %23, %24 : vector<12x32xf32>
    %c0_13 = arith.constant 0 : index
    %c0_14 = arith.constant 0 : index
    %26 = vector.load %arg6[%c0_13, %c0_14] : memref<160x32xbf16, #tpu.memory_space<vmem>>, vector<160x32xbf16>
    %c0_15 = arith.constant 0 : index
    %c0_16 = arith.constant 0 : index
    %27 = vector.load %arg7[%c0_15, %c0_16] : memref<1x32xf32, #tpu.memory_space<vmem>>, vector<1x32xf32>
    %28 = arith.truncf %25 : vector<12x32xf32> to vector<12x32xbf16>
    %29 = vector.extract_strided_slice %28 {offsets = [0, 0], sizes = [8, 32], strides = [1, 1]} : vector<12x32xbf16> to vector<8x32xbf16>
    %30 = vector.extract_strided_slice %28 {offsets = [1, 0], sizes = [8, 32], strides = [1, 1]} : vector<12x32xbf16> to vector<8x32xbf16>
    %31 = vector.extract_strided_slice %28 {offsets = [2, 0], sizes = [8, 32], strides = [1, 1]} : vector<12x32xbf16> to vector<8x32xbf16>
    %32 = vector.extract_strided_slice %28 {offsets = [3, 0], sizes = [8, 32], strides = [1, 1]} : vector<12x32xbf16> to vector<8x32xbf16>
    %33 = vector.extract_strided_slice %28 {offsets = [4, 0], sizes = [8, 32], strides = [1, 1]} : vector<12x32xbf16> to vector<8x32xbf16>
    %34 = tpu.concatenate %29, %30, %31, %32, %33 in 1 : vector<8x32xbf16>, vector<8x32xbf16>, vector<8x32xbf16>, vector<8x32xbf16>, vector<8x32xbf16> -> vector<8x160xbf16>
    %cst_17 = arith.constant dense<0.000000e+00> : vector<8x32xf32>
    %35 = tpu.matmul %34, %26, %cst_17 {dimension_numbers = #tpu.dot_dimension_numbers<[1], [0], [0], [1], [0, 0, 1, 1], [], []>} : vector<8x160xbf16>, vector<160x32xbf16>, vector<8x32xf32> -> vector<8x32xf32>
    %36 = vector.broadcast %27 : vector<1x32xf32> to vector<8x32xf32>
    %37 = arith.addf %35, %36 : vector<8x32xf32>
    %c0_18 = arith.constant 0 : index
    %c0_19 = arith.constant 0 : index
    %38 = vector.load %arg8[%c0_18, %c0_19] : memref<16x32xf32, #tpu.memory_space<vmem>>, vector<8x32xf32>
    tpu.vector_store %arg8[%c0_18, %c0_19], %37 {strides = array<i32>} : memref<16x32xf32, #tpu.memory_space<vmem>>, vector<8x32xf32>,
    return
  }
  func.func @transform_0(%arg0: i32) -> (i32, i32) {
    %c0_i32 = arith.constant 0 : i32
    %c0_i32_0 = arith.constant 0 : i32
    return %arg0, %c0_i32 : i32, i32
  }
  func.func @transform_1(%arg0: i32) -> (i32, i32) {
    %c0_i32 = arith.constant 0 : i32
    %c0_i32_0 = arith.constant 0 : i32
    %c0_i32_1 = arith.constant 0 : i32
    return %c0_i32, %c0_i32_0 : i32, i32
  }
  func.func @transform_2(%arg0: i32) -> (i32, i32) {
    %c0_i32 = arith.constant 0 : i32
    %c0_i32_0 = arith.constant 0 : i32
    %c0_i32_1 = arith.constant 0 : i32
    return %c0_i32, %c0_i32_0 : i32, i32
  }
  func.func @transform_3(%arg0: i32) -> (i32, i32) {
    %c0_i32 = arith.constant 0 : i32
    %c0_i32_0 = arith.constant 0 : i32
    %c0_i32_1 = arith.constant 0 : i32
    return %c0_i32, %c0_i32_0 : i32, i32
  }
  func.func @transform_4(%arg0: i32) -> (i32, i32) {
    %c0_i32 = arith.constant 0 : i32
    %c0_i32_0 = arith.constant 0 : i32
    %c0_i32_1 = arith.constant 0 : i32
    return %c0_i32, %c0_i32_0 : i32, i32
  }
  func.func @transform_5(%arg0: i32) -> (i32, i32) {
    %c0_i32 = arith.constant 0 : i32
    %c0_i32_0 = arith.constant 0 : i32
    %c0_i32_1 = arith.constant 0 : i32
    return %c0_i32, %c0_i32_0 : i32, i32
  }
  func.func @transform_6(%arg0: i32) -> (i32, i32) {
    %c0_i32 = arith.constant 0 : i32
    %c0_i32_0 = arith.constant 0 : i32
    %c0_i32_1 = arith.constant 0 : i32
    return %c0_i32, %c0_i32_0 : i32, i32
  }
  func.func @transform_7(%arg0: i32) -> (i32, i32) {
    %c0_i32 = arith.constant 0 : i32
    %c0_i32_0 = arith.constant 0 : i32
    return %arg0, %c0_i32 : i32, i32
  }
}

module attributes {stable_mosaic.version = 11 : i64} {
  func.func @_fused_cnn_kernel(%arg0: i32, %arg1: memref<16x64xbf16, #tpu.memory_space<vmem>>, %arg2: memref<192x32xbf16, #tpu.memory_space<vmem>>, %arg3: memref<1x32xf32, #tpu.memory_space<vmem>>, %arg4: memref<96x32xbf16, #tpu.memory_space<vmem>>, %arg5: memref<1x32xf32, #tpu.memory_space<vmem>>, %arg6: memref<160x32xbf16, #tpu.memory_space<vmem>>, %arg7: memref<1x32xf32, #tpu.memory_space<vmem>>, %arg8: memref<16x32xf32, #tpu.memory_space<vmem>>) attributes {dimension_semantics = [#tpu.dimension_semantics<parallel>], iteration_bounds = array<i64: 2>, scalar_prefetch = 0 : i64, scratch_operands = 0 : i64, tpu.core_type = #tpu.core_type<tc>, window_params = [{transform_indices = @transform_0, window_bounds = array<i64: 16, 64>}, {pipeline_mode = #tpu.pipeline_mode<synchronous>, transform_indices = @transform_1, window_bounds = array<i64: 192, 32>}, {pipeline_mode = #tpu.pipeline_mode<synchronous>, transform_indices = @transform_2, window_bounds = array<i64: 1, 32>}, {pipeline_mode = #tpu.pipeline_mode<synchronous>, transform_indices = @transform_3, window_bounds = array<i64: 96, 32>}, {pipeline_mode = #tpu.pipeline_mode<synchronous>, transform_indices = @transform_4, window_bounds = array<i64: 1, 32>}, {pipeline_mode = #tpu.pipeline_mode<synchronous>, transform_indices = @transform_5, window_bounds = array<i64: 160, 32>}, {pipeline_mode = #tpu.pipeline_mode<synchronous>, transform_indices = @transform_6, window_bounds = array<i64: 1, 32>}, {transform_indices = @transform_7, window_bounds = array<i64: 16, 32>}]} {
    %c0 = arith.constant 0 : index
    %c0_0 = arith.constant 0 : index
    %0 = vector.load %arg1[%c0, %c0_0] : memref<16x64xbf16, #tpu.memory_space<vmem>>, vector<16x64xbf16>
    %cst = arith.constant 0.000000e+00 : bf16
    %1 = vector.broadcast %cst : bf16 to vector<16x64xbf16>
    %2 = arith.maximumf %0, %1 : vector<16x64xbf16>
    %c0_1 = arith.constant 0 : index
    %c0_2 = arith.constant 0 : index
    %3 = vector.load %arg2[%c0_1, %c0_2] : memref<192x32xbf16, #tpu.memory_space<vmem>>, vector<192x32xbf16>
    %c0_3 = arith.constant 0 : index
    %c0_4 = arith.constant 0 : index
    %4 = vector.load %arg3[%c0_3, %c0_4] : memref<1x32xf32, #tpu.memory_space<vmem>>, vector<1x32xf32>
    %5 = vector.extract_strided_slice %2 {offsets = [0, 0], sizes = [14, 64], strides = [1, 1]} : vector<16x64xbf16> to vector<14x64xbf16>
    %6 = vector.extract_strided_slice %2 {offsets = [1, 0], sizes = [14, 64], strides = [1, 1]} : vector<16x64xbf16> to vector<14x64xbf16>
    %7 = vector.extract_strided_slice %2 {offsets = [2, 0], sizes = [14, 64], strides = [1, 1]} : vector<16x64xbf16> to vector<14x64xbf16>
    %8 = tpu.concatenate %5, %6, %7 in 1 : vector<14x64xbf16>, vector<14x64xbf16>, vector<14x64xbf16> -> vector<14x192xbf16>
    %cst_5 = arith.constant dense<0.000000e+00> : vector<14x32xf32>
    %9 = tpu.matmul %8, %3, %cst_5 {dimension_numbers = #tpu.dot_dimension_numbers<[1], [0], [0], [1], [0, 0, 1, 1], [], []>} : vector<14x192xbf16>, vector<192x32xbf16>, vector<14x32xf32> -> vector<14x32xf32>
    %10 = vector.broadcast %4 : vector<1x32xf32> to vector<14x32xf32>
    %11 = arith.addf %9, %10 : vector<14x32xf32>
    %cst_6 = arith.constant 0.000000e+00 : f32
    %12 = vector.broadcast %cst_6 : f32 to vector<14x32xf32>
    %13 = arith.maximumf %11, %12 : vector<14x32xf32>
    %c0_7 = arith.constant 0 : index
    %c0_8 = arith.constant 0 : index
    %14 = vector.load %arg4[%c0_7, %c0_8] : memref<96x32xbf16, #tpu.memory_space<vmem>>, vector<96x32xbf16>
    %c0_9 = arith.constant 0 : index
    %c0_10 = arith.constant 0 : index
    %15 = vector.load %arg5[%c0_9, %c0_10] : memref<1x32xf32, #tpu.memory_space<vmem>>, vector<1x32xf32>
    %16 = arith.truncf %13 : vector<14x32xf32> to vector<14x32xbf16>
    %17 = vector.extract_strided_slice %16 {offsets = [0, 0], sizes = [12, 32], strides = [1, 1]} : vector<14x32xbf16> to vector<12x32xbf16>
    %18 = vector.extract_strided_slice %16 {offsets = [1, 0], sizes = [12, 32], strides = [1, 1]} : vector<14x32xbf16> to vector<12x32xbf16>
    %19 = vector.extract_strided_slice %16 {offsets = [2, 0], sizes = [12, 32], strides = [1, 1]} : vector<14x32xbf16> to vector<12x32xbf16>
    %20 = tpu.concatenate %17, %18, %19 in 1 : vector<12x32xbf16>, vector<12x32xbf16>, vector<12x32xbf16> -> vector<12x96xbf16>
    %cst_11 = arith.constant dense<0.000000e+00> : vector<12x32xf32>
    %21 = tpu.matmul %20, %14, %cst_11 {dimension_numbers = #tpu.dot_dimension_numbers<[1], [0], [0], [1], [0, 0, 1, 1], [], []>} : vector<12x96xbf16>, vector<96x32xbf16>, vector<12x32xf32> -> vector<12x32xf32>
    %22 = vector.broadcast %15 : vector<1x32xf32> to vector<12x32xf32>
    %23 = arith.addf %21, %22 : vector<12x32xf32>
    %cst_12 = arith.constant 0.000000e+00 : f32
    %24 = vector.broadcast %cst_12 : f32 to vector<12x32xf32>
    %25 = arith.maximumf %23, %24 : vector<12x32xf32>
    %c0_13 = arith.constant 0 : index
    %c0_14 = arith.constant 0 : index
    %26 = vector.load %arg6[%c0_13, %c0_14] : memref<160x32xbf16, #tpu.memory_space<vmem>>, vector<160x32xbf16>
    %c0_15 = arith.constant 0 : index
    %c0_16 = arith.constant 0 : index
    %27 = vector.load %arg7[%c0_15, %c0_16] : memref<1x32xf32, #tpu.memory_space<vmem>>, vector<1x32xf32>
    %28 = arith.truncf %25 : vector<12x32xf32> to vector<12x32xbf16>
    %29 = vector.extract_strided_slice %28 {offsets = [0, 0], sizes = [8, 32], strides = [1, 1]} : vector<12x32xbf16> to vector<8x32xbf16>
    %30 = vector.extract_strided_slice %28 {offsets = [1, 0], sizes = [8, 32], strides = [1, 1]} : vector<12x32xbf16> to vector<8x32xbf16>
    %31 = vector.extract_strided_slice %28 {offsets = [2, 0], sizes = [8, 32], strides = [1, 1]} : vector<12x32xbf16> to vector<8x32xbf16>
    %32 = vector.extract_strided_slice %28 {offsets = [3, 0], sizes = [8, 32], strides = [1, 1]} : vector<12x32xbf16> to vector<8x32xbf16>
    %33 = vector.extract_strided_slice %28 {offsets = [4, 0], sizes = [8, 32], strides = [1, 1]} : vector<12x32xbf16> to vector<8x32xbf16>
    %34 = tpu.concatenate %29, %30, %31, %32, %33 in 1 : vector<8x32xbf16>, vector<8x32xbf16>, vector<8x32xbf16>, vector<8x32xbf16>, vector<8x32xbf16> -> vector<8x160xbf16>
    %cst_17 = arith.constant dense<0.000000e+00> : vector<8x32xf32>
    %35 = tpu.matmul %34, %26, %cst_17 {dimension_numbers = #tpu.dot_dimension_numbers<[1], [0], [0], [1], [0, 0, 1, 1], [], []>} : vector<8x160xbf16>, vector<160x32xbf16>, vector<8x32xf32> -> vector<8x32xf32>
    %36 = vector.broadcast %27 : vector<1x32xf32> to vector<8x32xf32>
    %37 = arith.addf %35, %36 : vector<8x32xf32>
    %c0_18 = arith.constant 0 : index
    %c0_19 = arith.constant 0 : index
    %38 = vector.load %arg8[%c0_18, %c0_19] : memref<16x32xf32, #tpu.memory_space<vmem>>, vector<8x32xf32>
    tpu.vector_store %arg8[%c0_18, %c0_19], %37 {strides = array<i32>} : memref<16x32xf32, #tpu.memory_space<vmem>>, vector<8x32xf32>,
    return
  }
  func.func @transform_0(%arg0: i32) -> (i32, i32) {
    %c0_i32 = arith.constant 0 : i32
    %c0_i32_0 = arith.constant 0 : i32
    return %arg0, %c0_i32 : i32, i32
  }
  func.func @transform_1(%arg0: i32) -> (i32, i32) {
    %c0_i32 = arith.constant 0 : i32
    %c0_i32_0 = arith.constant 0 : i32
    %c0_i32_1 = arith.constant 0 : i32
    return %c0_i32, %c0_i32_0 : i32, i32
  }
  func.func @transform_2(%arg0: i32) -> (i32, i32) {
    %c0_i32 = arith.constant 0 : i32
    %c0_i32_0 = arith.constant 0 : i32
    %c0_i32_1 = arith.constant 0 : i32
    return %c0_i32, %c0_i32_0 : i32, i32
  }
  func.func @transform_3(%arg0: i32) -> (i32, i32) {
    %c0_i32 = arith.constant 0 : i32
    %c0_i32_0 = arith.constant 0 : i32
    %c0_i32_1 = arith.constant 0 : i32
    return %c0_i32, %c0_i32_0 : i32, i32
  }
  func.func @transform_4(%arg0: i32) -> (i32, i32) {
    %c0_i32 = arith.constant 0 : i32
    %c0_i32_0 = arith.constant 0 : i32
    %c0_i32_1 = arith.constant 0 : i32
    return %c0_i32, %c0_i32_0 : i32, i32
  }
  func.func @transform_5(%arg0: i32) -> (i32, i32) {
    %c0_i32 = arith.constant 0 : i32
    %c0_i32_0 = arith.constant 0 : i32
    %c0_i32_1 = arith.constant 0 : i32
    return %c0_i32, %c0_i32_0 : i32, i32
  }
  func.func @transform_6(%arg0: i32) -> (i32, i32) {
    %c0_i32 = arith.constant 0 : i32
    %c0_i32_0 = arith.constant 0 : i32
    %c0_i32_1 = arith.constant 0 : i32
    return %c0_i32, %c0_i32_0 : i32, i32
  }
  func.func @transform_7(%arg0: i32) -> (i32, i32) {
    %c0_i32 = arith.constant 0 : i32
    %c0_i32_0 = arith.constant 0 : i32
    return %arg0, %c0_i32 : i32, i32
  }
}

</mosaic_0001>

<bundles_post_ra>
// kernel: tpu_custom_call.1
= control target key start
LH: loop header
LB: loop body
LE: loop exit
PB: predicated region body
PF: predicated region fallthrough
CT: control target
= control target key end

     0   :  { %12 = vsyncpa [#allocation3], 0  ;;  %s1300_s0 = inlined_call_operand.vmem [shape: bf16[32,64], index: 0, kind: input, shape index: {}]   ;;  %s1301_s1 = inlined_call_operand.vmem [shape: bf16[192,32], index: 1, kind: input, shape index: {}]   ;;  %s1302_s2 = inlined_call_operand.vmem [shape: f32[1,32], index: 2, kind: input, shape index: {}]   ;;  %s1303_s3 = inlined_call_operand.vmem [shape: bf16[96,32], index: 3, kind: input, shape index: {}]   ;;  %s1304_s4 = inlined_call_operand.vmem [shape: f32[1,32], index: 4, kind: input, shape index: {}]   ;;  %s1305_s5 = inlined_call_operand.vmem [shape: bf16[160,32], index: 5, kind: input, shape index: {}]   ;;  %s1306_s6 = inlined_call_operand.vmem [shape: f32[1,32], index: 6, kind: input, shape index: {}]   ;;  %s1307_s7 = inlined_call_operand.hbm [shape: f32[32,32], index: 7, kind: output, shape index: {}]  }
   0x1   :  { %14 = vsyncpa [#allocation3 + $0x1], 0  ;;  %s1066_s24 = smov 0   ;;  %s1068_s25 = smov 0  }
   0x2   :  { %s1070_s26 = smov 0   ;;  %s1072_s27 = smov 0  }
   0x3 LB: > { %s1087_s28 = sadd.s32 4294967295, %s1015_s27   ;;  %s807_s29 = sadd.s32 4294967294, %s1015_s27   ;;  %s1015_s27 = sphi %s1072_s27, %s1313_s27   ;;  %s1011_s26 = sphi %s1070_s26, %s1312_s26   ;;  %s1007_s25 = sphi %s1068_s25, %s1311_s25   ;;  %s1003_s24 = sphi %s1066_s24, %s1310_s24  }
   0x4   : > { %s1091_s30 = sadd.s32 1, %s1015_s27   ;;  %s179_s8 = sadd.s32 1, %s1011_s26 }
   0x5   : > { %s176_s9 = ssub.s32 %s1015_s27, %s1091_s30  ;;  %p189_p0 = scmp.ne.s32.totalorder %s1011_s26, %s1007_s25 }
   0x6   : > { %p177_p1 = scmp.eq.s32.totalorder %s176_s9, 0  ;;  %p190_p2 = scmp.eq.s32.totalorder %s1087_s28, 1 }
   0x7   : > { %p195_p3 = scmp.ne.s32.totalorder %s1007_s25, %s1003_s24  ;;  %p196_p4 = scmp.eq.s32.totalorder %s807_s29, 1 }
   0x8   : > { %s1102_s10 = scalar_select %p177_p1, %s1011_s26, %s179_s8  }
   0x9   : > { %p1104_p5 = por %p190_p2, %p189_p0  ;;  %p1108_p6 = por %p196_p4, %p195_p3 }
   0xa   : > { %p810_p7 = scmp.ge.s32.totalorder %s1015_s27, 1  ;;  %p241_p8 = scmp.lt.s32.totalorder %s1015_s27, 3 }
   0xc   : > { %p242_p9 = pnand %p810_p7, %p241_p8 }
   0xd   : > { %s812_s13 = sshll.u32 (!%p242_p9), %s1087_s28, 1  ;;  %v925_v0 = vld [vmem:[%s1301_s1] sm:$0xff] (!%p242_p9)   ;;  %v1017_v1 = vmov (!%p242_p9), 0   ;;  %v926_v2 = vld [vmem:[%s1301_s1 + $0x8] sm:$0xff] (!%p242_p9)   ;;  %v927_v3 = vld [vmem:[%s1301_s1 + $0x10] sm:$0xff] (!%p242_p9)   ;;  %vm325_vm0 = vcmask (!%p242_p9), 523264  }
   0xe   : > { %245 = sbr.rel (%p242_p9) target bundleno = 1069 (0x42d), region = 48  ;;  %p274_p10 = scmp.lt.s32.totalorder (!%p242_p9), %s812_s13, 3  ;;  %410 = vmatprep.subr.bf16.mxu0 (!%p242_p9), %v1017_v1  ;;  %v928_v9 = vld [vmem:[%s1301_s1 + $0x18] sm:$0xff] (!%p242_p9)   ;;  %v929_v14 = vld [vmem:[%s1301_s1 + $0x20] sm:$0xff] (!%p242_p9)   ;;  %v930_v16 = vld [vmem:[%s1301_s1 + $0x28] sm:$0xff] (!%p242_p9)   ;;  %v1019_v26 = vmov (!%p242_p9), 0.0  }
   0xf   : > { %411 = vmatpush1.bf16.msra.mxu0 (!%p242_p9), %v925_v0  ;;  %s1018_s16 = smov (!%p242_p9), 64   ;;  %v931_v17 = vld [vmem:[%s1301_s1 + $0x30] sm:$0xff] (!%p242_p9)   ;;  %v932_v18 = vld [vmem:[%s1301_s1 + $0x38] sm:$0xff] (!%p242_p9)   ;;  %v933_v19 = vld [vmem:[%s1301_s1 + $0x40] sm:$0xff] (!%p242_p9)   ;;  %862 = vmatprep.subr.bf16.mxu1 (!%p242_p9), %v1019_v26  ;;  %vm1020_vm1 = vmmov (!%p242_p9), 0   ;;  %s1021_s17 = smov (!%p242_p9), 32  }
  0x10   : > { %412 = vmatprep.subr.bf16.mxu0 (!%p242_p9), %v1017_v1  ;;  %v934_v20 = vld [vmem:[%s1301_s1 + $0x48] sm:$0xff] (!%p242_p9)   ;;  %v935_v21 = vld [vmem:[%s1301_s1 + $0x50] sm:$0xff] (!%p242_p9)   ;;  %v936_v22 = vld [vmem:[%s1301_s1 + $0x58] sm:$0xff] (!%p242_p9)   ;;  %874 = vmatprep.mubr.msk.bf16.mxu1 (!%p242_p9), %vm1020_vm1, %v1019_v26  ;;  %vm480_vm2 = vcmask (!%p242_p9), 261120   ;;  %vm527_vm3 = vcmask (!%p242_p9), 785408   ;;  %s1022_s14 = smov (!%p242_p9), 96  }
  0x11   : > { %v937_v25 = vld [vmem:[%s1303_s3] sm:$0xff] (!%p242_p9)   ;;  %v938_v27 = vld [vmem:[%s1303_s3 + $0x8] sm:$0xff] (!%p242_p9)   ;;  %v939_v28 = vld [vmem:[%s1303_s3 + $0x10] sm:$0xff] (!%p242_p9)   ;;  %s854_s20 = sshll.u32 (!%p242_p9), %s1087_s28, 8  ;;  %s1023_s9 = smov (!%p242_p9), [#allocation2]  }
  0x12   : > { %863 = vmatpush3.bf16.msra.mxu1 (!%p242_p9), %v937_v25  ;;  %v940_v29 = vld [vmem:[%s1303_s3 + $0x18] sm:$0xff] (!%p242_p9)   ;;  %v941_v30 = vld [vmem:[%s1303_s3 + $0x20] sm:$0xff] (!%p242_p9)   ;;  %v942_v31 = vld [vmem:[%s1303_s3 + $0x28] sm:$0xff] (!%p242_p9)   ;;  %s1254_s29 = scalar_lea.hbm (!%p242_p9), %s1307_s7, %s854_s20 }
  0x13   : > { %413 = vmatpush1.bf16.msra.mxu0 (!%p242_p9), %v926_v2  ;;  %864 = vmatprep.subr.bf16.mxu1 (!%p242_p9), %v1019_v26  ;;  %v815_v32 = vld [vmem:[%s1302_s2] ss:$0 sm:$0xff] (!%p242_p9)  ;;  %v944_v52 = vld [vmem:[%s1305_s5 + $0x8] sm:$0xff] (!%p242_p9)   ;;  %v945_v53 = vld [vmem:[%s1305_s5 + $0x10] sm:$0xff] (!%p242_p9)  }
  0x14   : > { %414 = vmatprep.subr.bf16.mxu0 (!%p242_p9), %v1017_v1  ;;  %v943_v51 = vld [vmem:[%s1305_s5] sm:$0xff] (!%p242_p9)   ;;  %v946_v54 = vld [vmem:[%s1305_s5 + $0x18] sm:$0xff] (!%p242_p9)   ;;  %v948_v56 = vld [vmem:[%s1305_s5 + $0x28] sm:$0xff] (!%p242_p9)  }
  0x15   : > { %s1315_s13 = smov (!%p274_p10, %s812_s13), 3  ;;  %v947_v55 = vld [vmem:[%s1305_s5 + $0x20] sm:$0xff]   ;;  %v949_v57 = vld [vmem:[%s1305_s5 + $0x30] sm:$0xff]   ;;  %v950_v58 = vld [vmem:[%s1305_s5 + $0x38] sm:$0xff]  }
  0x16   : > { %s813_s18 = sshll.u32 %s1315_s13, 2  ;;  %865 = vmatpush3.bf16.msra.mxu1 %v938_v27  ;;  %v951_v59 = vld [vmem:[%s1305_s5 + $0x40] sm:$0xff]   ;;  %v952_v2 = vld [vmem:[%s1305_s5 + $0x48] sm:$0xff]   ;;  %s957_s13 = sshll.u32 %s1023_s9, 4  ;;  %s958_s13 = int_to_ptr.vmem [resolvable:$false] %s957_s13 }
  0x17   : > { %s277_s21 = scalar_lea.vmem %s1300_s0, %s813_s18  ;;  %415 = vmatpush1.bf16.msra.mxu0 %v927_v3  ;;  %866 = vmatprep.subr.bf16.mxu1 %v1019_v26  ;;  %v829_v60 = vld [vmem:[%s1304_s4] ss:$0 sm:$0xff] }
  0x18   : > { %v281_v4 = vld [vmem:[%s277_s21] sm:$0xf]  ;;  %v282_v5 = vld [vmem:[%s277_s21 + $0x4] sm:$0xf]  ;;  %416 = vmatprep.subr.bf16.mxu0 %v1017_v1 }
  0x19   : > { %v283_v6 = vmax.bf16 %v1017_v1, %v281_v4  ;;  %v284_v7 = vmax.bf16 %v1017_v1, %v282_v5 }
  0x1a   : > { %867 = vmatpush3.bf16.msra.mxu1 %v939_v28 }
  0x1b   : > { %v814_v8 = vcombine.low %v283_v6, %v284_v7  ;;  %417 = vmatpush1.bf16.msra.mxu0 %v928_v9  ;;  %868 = vmatprep.subr.bf16.mxu1 %v1019_v26 }
  0x1c   : > { %418 = vmatprep.subr.bf16.mxu0 %v1017_v1 }
  0x1d   : > { %v316_v10 = vshrl.u32 %v814_v8, 16  ;;  %v318_v11 = vshll.u32 %v814_v8, 16  ;;  %v324_v12 = vrot.slane %v814_v8, 1 }
  0x1e   : > { %869 = vmatpush3.bf16.msra.mxu1 %v940_v29 }
  0x1f   : > { %v320_v13 = vrot.slane %v318_v11, 1  ;;  %828 = vmatprep.mubr.msk.bf16.mxu0 %vm325_vm0, %v324_v12  ;;  %419 = vmatpush1.bf16.msra.mxu0 %v929_v14 }
  0x20   : > { %420 = vmatprep.subr.bf16.mxu0 %v1017_v1  ;;  %870 = vmatprep.subr.bf16.mxu1 %v1019_v26 }
  0x21   : > { %v321_v15 = vor.u32 %v320_v13, %v316_v10 }
  0x22   : > { %871 = vmatpush3.bf16.msra.mxu1 %v941_v30 }
  0x23   : > { %322 = vrot.lane.b32.xlu0 %v321_v15, %s1018_s16  ;;  %421 = vmatpush1.bf16.msra.mxu0 %v930_v16 }
  0x24   : > { %422 = vmatprep.subr.bf16.mxu0 %v1017_v1  ;;  %872 = vmatprep.subr.bf16.mxu1 %v1019_v26 }
  0x26   : > { %873 = vmatpush3.bf16.msra.mxu1 %v942_v31 }
  0x27   : > { %423 = vmatpush1.bf16.msra.mxu0 %v931_v17  ;;  %690 = vmatprep.subr.bf16.mxu1 %v1017_v1 }
  0x28   : > { %424 = vmatprep.subr.bf16.mxu0 %v1017_v1 }
  0x2b   : > { %425 = vmatpush1.bf16.msra.mxu0 %v932_v18 }
  0x2c   : > { %426 = vmatprep.subr.bf16.mxu0 %v1017_v1 }
  0x2f   : > { %427 = vmatpush1.bf16.msra.mxu0 %v933_v19 }
  0x30   : > { %428 = vmatprep.subr.bf16.mxu0 %v1017_v1 }
  0x33   : > { %429 = vmatpush1.bf16.msra.mxu0 %v934_v20 }
  0x34   : > { %430 = vmatprep.subr.bf16.mxu0 %v1017_v1 }
  0x37   : > { %431 = vmatpush1.bf16.msra.mxu0 %v935_v21 }
  0x38   : > { %432 = vmatprep.subr.bf16.mxu0 %v1017_v1 }
  0x3b   : > { %433 = vmatpush1.bf16.msra.mxu0 %v936_v22  ;;  %v837_v22 = vld [vmem:[%s1306_s6] ss:$0 sm:$0xff] }
  0x95   : > { %v323_v23 = vpop.permute.xlu0 %322 }
  0x96   : > { %v327_v24 = vsel %vm325_vm0, %v814_v8, %v323_v23 }
  0x97   : > { %443 = vmatmul.mubr.bf16.vlgmr.msra.gmra.mrb[0].mxu0 %v327_v24 }
 0x16a   : > { %v444_v33 = vpop.f32.mrb[0].mxu0 }
 0x16b   : > { %v445_v34 = vadd.f32 %v815_v32, %v444_v33  ;;  %v446_v35 = vpop.f32.mrb[1].mxu0 }
 0x16c   : > { %v447_v36 = vpop.f32.mrb[2].mxu0 }
 0x16d   : > { %v448_v37 = vadd.f32 %v815_v32, %v447_v36  ;;  %v449_v38 = vpop.f32.mrb[3].mxu0  ;;  %v451_v39 = vmax.f32 %v445_v34, 0.0 }
 0x16f   : > { %v452_v40 = vmax.f32 %v448_v37, 0.0 }
 0x171   : > { %v466_v41 = vpack.c.bf16 %v452_v40, %v451_v39 }
 0x173   : > { %v477_v42 = vrot.slane %v466_v41, 1  ;;  %v470_v43 = vshll.u32 %v466_v41, 16  ;;  %v468_v44 = vshrl.u32 %v466_v41, 16 }
 0x175   : > { %478 = vrot.lane.b32.xlu1 %v477_v42, %s1018_s16  ;;  %v472_v45 = vrot.slane %v470_v43, 1 }
 0x177   : > { %v473_v46 = vor.u32 %v472_v45, %v468_v44 }
 0x179   : > { %474 = vrot.lane.b32.xlu0 %v473_v46, %s1021_s17 }
 0x1e7   : > { %v479_v48 = vpop.permute.xlu1 %478 }
 0x1eb   : > { %v475_v47 = vpop.permute.xlu0 %474 }
 0x1ec   : > { %v482_v49 = vsel %vm480_vm2, %v466_v41, %v475_v47 }
 0x1ed   : > { %v484_v50 = vsel %vm325_vm0, %v482_v49, %v479_v48 }
 0x1ee   : > { %875 = vmatmul.mubr.msk.bf16.vlgmr.msra.gmra.mrb[0].mxu1 %vm527_vm3, %v484_v50 }
 0x1ef   : > { %691 = vmatpush1.bf16.msra.mxu1 %v943_v51 }
 0x1f0   : > { %692 = vmatprep.subr.bf16.mxu1 %v1017_v1 }
 0x1f3   : > { %693 = vmatpush1.bf16.msra.mxu1 %v944_v52 }
 0x1f4   : > { %694 = vmatprep.subr.bf16.mxu1 %v1017_v1 }
 0x1f7   : > { %695 = vmatpush1.bf16.msra.mxu1 %v945_v53 }
 0x1f8   : > { %696 = vmatprep.subr.bf16.mxu1 %v1017_v1 }
 0x1fb   : > { %697 = vmatpush1.bf16.msra.mxu1 %v946_v54 }
 0x1fc   : > { %698 = vmatprep.subr.bf16.mxu1 %v1017_v1 }
 0x1ff   : > { %699 = vmatpush1.bf16.msra.mxu1 %v947_v55 }
 0x200   : > { %700 = vmatprep.subr.bf16.mxu1 %v1017_v1 }
 0x203   : > { %701 = vmatpush1.bf16.msra.mxu1 %v948_v56 }
 0x204   : > { %702 = vmatprep.subr.bf16.mxu1 %v1017_v1 }
 0x207   : > { %703 = vmatpush1.bf16.msra.mxu1 %v949_v57 }
 0x208   : > { %704 = vmatprep.subr.bf16.mxu1 %v1017_v1 }
 0x20b   : > { %705 = vmatpush1.bf16.msra.mxu1 %v950_v58 }
 0x20c   : > { %706 = vmatprep.subr.bf16.mxu1 %v1017_v1 }
 0x20f   : > { %707 = vmatpush1.bf16.msra.mxu1 %v951_v59 }
 0x210   : > { %708 = vmatprep.subr.bf16.mxu1 %v1017_v1 }
 0x213   : > { %709 = vmatpush1.bf16.msra.mxu1 %v952_v2 }
 0x2c1   : > { %v564_v61 = vpop.f32.mrb[0].mxu1 }
 0x2c2   : > { %v565_v62 = vadd.f32 %v829_v60, %v564_v61  ;;  %v876_v63 = vpop.f32.mrb[1].mxu1 }
 0x2c3   : > { %v567_v0 = vpop.f32.mrb[2].mxu1 }
 0x2c4   : > { %v568_v3 = vadd.f32 %v829_v60, %v567_v0  ;;  %v877_v4 = vpop.f32.mrb[3].mxu1  ;;  %v571_v5 = vmax.f32 %v565_v62, 0.0 }
 0x2c6   : > { %v572_v6 = vmax.f32 %v568_v3, 0.0 }
 0x2c8   : > { %v594_v7 = vpack.c.bf16 %v572_v6, %v571_v5 }
 0x2ca   : > { %v613_v8 = vrot.slane %v594_v7, 2  ;;  %v605_v9 = vrot.slane %v594_v7, 1  ;;  %v596_v10 = vshrl.u32 %v594_v7, 16  ;;  %v598_v11 = vshll.u32 %v594_v7, 16 }
 0x2cc   : > { %848 = vmatprep.mubr.msk.bf16.mxu1 %vm480_vm2, %v613_v8  ;;  %606 = vrot.lane.b32.xlu0 %v605_v9, %s1018_s16  ;;  %v600_v1 = vrot.slane %v598_v11, 1  ;;  %v608_v13 = vrot.slane %v596_v10, 1  ;;  %v609_v14 = vrot.slane %v598_v11, 2  ;;  %s270_s16 = sand.u32 1, %s1007_s25  }
 0x2cd   : > { %s811_s15 = sshll.u32 %s270_s16, 4  ;;  %s1259_s28 = scalar_lea.sflag [#allocation3], %s270_s16 }
 0x2ce   : > { %v601_v12 = vor.u32 %v600_v1, %v596_v10  ;;  %v610_v15 = vor.u32 %v609_v14, %v608_v13  ;;  %s272_s18 = scalar_lea.vmem [#allocation2], %s811_s15 }
 0x2cf   : > { %s745_s19 = sshll.u32 %s272_s18, 4  ;;  %s1256_s19 = int_to_ptr.vmem [resolvable:$true] %s745_s19 }
 0x2d0   : > { %602 = vrot.lane.b32.xlu1 %v601_v12, %s1021_s17  ;;  %s953_s8 = scalar_lea.vmem %s1256_s19, 256  ;;  %p960_p0 = scmp.lt.s32.totalorder %s1256_s19, %s958_s13 }
 0x2d1   : > { %p954_p11 = scmp.ne.s32.totalorder %s1256_s19, %s953_s8 }
 0x2d3   : > { %p955_p12 = pnand %p954_p11, %p1104_p5 }
 0x2d4   : > { %611 = vrot.lane.b32.xlu1 %v610_v15, %s1022_s14  ;;  %s959_s14 = scalar_lea.vmem %s958_s13, 512 }
 0x2d5   : > { %p956_p13 = pneg %p955_p12  ;;  %p961_p1 = scmp.lt.s32.totalorder %s959_s14, %s953_s8 }
 0x2d7   : > { %p962_p2 = por %p961_p1, %p960_p0 }
 0x2d9   : > { %p963_p3 = pnand %p962_p2, %p956_p13 }
 0x33e   : > { %v607_v18 = vpop.permute.xlu0 %606 }
 0x342   : > { %v603_v16 = vpop.permute.xlu1 %602 }
 0x343   : > { %v615_v17 = vsel %vm480_vm2, %v594_v7, %v603_v16 }
 0x344   : > { %v617_v19 = vsel %vm325_vm0, %v615_v17, %v607_v18 }
 0x346   : > { %v612_v20 = vpop.permute.xlu1 %611 }
 0x347   : > { %v619_v21 = vsel %vm527_vm3, %v617_v19, %v612_v20 }
 0x348   : > { %723 = vmatmul.mubr.bf16.vlgmr.msra.gmra.mrb[4].mxu1 %v619_v21 }
 0x41b   : > { %v724_v23 = vpop.f32.mrb[4].mxu1 }
 0x41c   : > { %v725_v24 = vadd.f32 %v837_v22, %v724_v23  ;;  %v726_v25 = vpop.f32.mrb[5].mxu1 }
 0x41d   : > { %v727_v26 = vpop.f32.mrb[6].mxu1 }
 0x41e   : > { %730 = vst.msk [vmem:[%s272_s18] sm:$0xff] %vm480_vm2, %v725_v24  ;;  %v728_v27 = vpop.f32.mrb[7].mxu1 }
 0x41f   : > { %966 = shalt.err (!%p963_p3)
}
 0x420   : > { %s967_s16 = scalar_lea.hbm %s1254_s29, 256  ;;  %s971_s20 = scalar_lea.hbm %s1307_s7, 512 }
 0x421   : > { %p968_p4 = scmp.ne.s32.totalorder %s1254_s29, %s967_s16  ;;  %p972_p9 = scmp.lt.u32.totalorder %s1254_s29, %s1307_s7 }
 0x422   : > { %p973_p10 = scmp.lt.u32.totalorder %s971_s20, %s967_s16  ;;  %p975_p12 = scmp.lt.u32.totalorder %s967_s16, %s1254_s29 }
 0x423   : > { %p969_p7 = pnand %p968_p4, %p1104_p5 }
 0x424   : > { %p974_p11 = por %p973_p10, %p972_p9 }
 0x425   : > { %p970_p8 = pneg %p969_p7 }
 0x426   : > { %p976_p13 = por %p975_p12, %p974_p11 }
 0x428   : > { %p977_p0 = pnand %p976_p13, %p970_p8 }
 0x42a   : > { %980 = shalt.err (!%p977_p0)
}
 0x42b   : > { %s1024_s22 = smov 128   ;;  %s1025_s23 = smov 8  }
 0x42c   : > { %878 = dma.vmem_to_hbm [thread:$0]  (%p1104_p5), %s1256_s19, 256, %s1254_s29, %s1259_s28, %s1024_s22, %s1024_s22, %s1025_s23  }
 0x42d PF: > { %p884_p1 = scmp.ge.s32.totalorder %s1015_s27, 2  ;;  %s760_s8 = sand.u32 1, %s1003_s24  }
 0x42e   : > { %s761_s9 = scalar_lea.sflag [#allocation3], %s760_s8 }
 0x42f   : > { %p881_p2 = pnand %p884_p1, %p1108_p6 }
 0x431   : > { %998 = dma.done.wait (!%p881_p2), %s761_s9, 256  }
 0x432   : > { %1000 = vsyncadd (!%p881_p2), %s761_s9, 4294967040  ;;  %p17_p3 = scmp.ge.s32.totalorder %s1091_s30, 4   ;;  %s1310_s24 = smov %s1007_s25 }
 0x433   : > { %s1311_s25 = smov %s1011_s26  ;;  %s1312_s26 = smov %s1102_s10 }
 0x434   : > { %s1313_s27 = smov %s1091_s30  ;;  %19 = sbr.rel (!%p17_p3) target bundleno = 3 (0x3), region = 83 }
 0x43b   :  { %766 = vsyncpa [#allocation3], 1 }
 0x43c   :  { %768 = vsyncpa [#allocation3 + $0x1], 1 }

// kernel: tpu_custom_call.1
= control target key start
LH: loop header
LB: loop body
LE: loop exit
PB: predicated region body
PF: predicated region fallthrough
CT: control target
= control target key end

     0   :  { %12 = vsyncpa [#allocation3], 0  ;;  %s1300_s0 = inlined_call_operand.vmem [shape: bf16[32,64], index: 0, kind: input, shape index: {}]   ;;  %s1301_s1 = inlined_call_operand.vmem [shape: bf16[192,32], index: 1, kind: input, shape index: {}]   ;;  %s1302_s2 = inlined_call_operand.vmem [shape: f32[1,32], index: 2, kind: input, shape index: {}]   ;;  %s1303_s3 = inlined_call_operand.vmem [shape: bf16[96,32], index: 3, kind: input, shape index: {}]   ;;  %s1304_s4 = inlined_call_operand.vmem [shape: f32[1,32], index: 4, kind: input, shape index: {}]   ;;  %s1305_s5 = inlined_call_operand.vmem [shape: bf16[160,32], index: 5, kind: input, shape index: {}]   ;;  %s1306_s6 = inlined_call_operand.vmem [shape: f32[1,32], index: 6, kind: input, shape index: {}]   ;;  %s1307_s7 = inlined_call_operand.hbm [shape: f32[32,32], index: 7, kind: output, shape index: {}]  }
   0x1   :  { %14 = vsyncpa [#allocation3 + $0x1], 0  ;;  %s1066_s24 = smov 0   ;;  %s1068_s25 = smov 0  }
   0x2   :  { %s1070_s26 = smov 0   ;;  %s1072_s27 = smov 0  }
   0x3 LB: > { %s1087_s28 = sadd.s32 4294967295, %s1015_s27   ;;  %s807_s29 = sadd.s32 4294967294, %s1015_s27   ;;  %s1015_s27 = sphi %s1072_s27, %s1313_s27   ;;  %s1011_s26 = sphi %s1070_s26, %s1312_s26   ;;  %s1007_s25 = sphi %s1068_s25, %s1311_s25   ;;  %s1003_s24 = sphi %s1066_s24, %s1310_s24  }
   0x4   : > { %s1091_s30 = sadd.s32 1, %s1015_s27   ;;  %s179_s8 = sadd.s32 1, %s1011_s26 }
   0x5   : > { %s176_s9 = ssub.s32 %s1015_s27, %s1091_s30  ;;  %p189_p0 = scmp.ne.s32.totalorder %s1011_s26, %s1007_s25 }
   0x6   : > { %p177_p1 = scmp.eq.s32.totalorder %s176_s9, 0  ;;  %p190_p2 = scmp.eq.s32.totalorder %s1087_s28, 1 }
   0x7   : > { %p195_p3 = scmp.ne.s32.totalorder %s1007_s25, %s1003_s24  ;;  %p196_p4 = scmp.eq.s32.totalorder %s807_s29, 1 }
   0x8   : > { %s1102_s10 = scalar_select %p177_p1, %s1011_s26, %s179_s8  }
   0x9   : > { %p1104_p5 = por %p190_p2, %p189_p0  ;;  %p1108_p6 = por %p196_p4, %p195_p3 }
   0xa   : > { %p810_p7 = scmp.ge.s32.totalorder %s1015_s27, 1  ;;  %p241_p8 = scmp.lt.s32.totalorder %s1015_s27, 3 }
   0xc   : > { %p242_p9 = pnand %p810_p7, %p241_p8 }
   0xd   : > { %s812_s13 = sshll.u32 (!%p242_p9), %s1087_s28, 1  ;;  %v925_v0 = vld [vmem:[%s1301_s1] sm:$0xff] (!%p242_p9)   ;;  %v1017_v1 = vmov (!%p242_p9), 0   ;;  %v926_v2 = vld [vmem:[%s1301_s1 + $0x8] sm:$0xff] (!%p242_p9)   ;;  %v927_v3 = vld [vmem:[%s1301_s1 + $0x10] sm:$0xff] (!%p242_p9)   ;;  %vm325_vm0 = vcmask (!%p242_p9), 523264  }
   0xe   : > { %245 = sbr.rel (%p242_p9) target bundleno = 1069 (0x42d), region = 48  ;;  %p274_p10 = scmp.lt.s32.totalorder (!%p242_p9), %s812_s13, 3  ;;  %410 = vmatprep.subr.bf16.mxu0 (!%p242_p9), %v1017_v1  ;;  %v928_v9 = vld [vmem:[%s1301_s1 + $0x18] sm:$0xff] (!%p242_p9)   ;;  %v929_v14 = vld [vmem:[%s1301_s1 + $0x20] sm:$0xff] (!%p242_p9)   ;;  %v930_v16 = vld [vmem:[%s1301_s1 + $0x28] sm:$0xff] (!%p242_p9)   ;;  %v1019_v26 = vmov (!%p242_p9), 0.0  }
   0xf   : > { %411 = vmatpush1.bf16.msra.mxu0 (!%p242_p9), %v925_v0  ;;  %s1018_s16 = smov (!%p242_p9), 64   ;;  %v931_v17 = vld [vmem:[%s1301_s1 + $0x30] sm:$0xff] (!%p242_p9)   ;;  %v932_v18 = vld [vmem:[%s1301_s1 + $0x38] sm:$0xff] (!%p242_p9)   ;;  %v933_v19 = vld [vmem:[%s1301_s1 + $0x40] sm:$0xff] (!%p242_p9)   ;;  %862 = vmatprep.subr.bf16.mxu1 (!%p242_p9), %v1019_v26  ;;  %vm1020_vm1 = vmmov (!%p242_p9), 0   ;;  %s1021_s17 = smov (!%p242_p9), 32  }
  0x10   : > { %412 = vmatprep.subr.bf16.mxu0 (!%p242_p9), %v1017_v1  ;;  %v934_v20 = vld [vmem:[%s1301_s1 + $0x48] sm:$0xff] (!%p242_p9)   ;;  %v935_v21 = vld [vmem:[%s1301_s1 + $0x50] sm:$0xff] (!%p242_p9)   ;;  %v936_v22 = vld [vmem:[%s1301_s1 + $0x58] sm:$0xff] (!%p242_p9)   ;;  %874 = vmatprep.mubr.msk.bf16.mxu1 (!%p242_p9), %vm1020_vm1, %v1019_v26  ;;  %vm480_vm2 = vcmask (!%p242_p9), 261120   ;;  %vm527_vm3 = vcmask (!%p242_p9), 785408   ;;  %s1022_s14 = smov (!%p242_p9), 96  }
  0x11   : > { %v937_v25 = vld [vmem:[%s1303_s3] sm:$0xff] (!%p242_p9)   ;;  %v938_v27 = vld [vmem:[%s1303_s3 + $0x8] sm:$0xff] (!%p242_p9)   ;;  %v939_v28 = vld [vmem:[%s1303_s3 + $0x10] sm:$0xff] (!%p242_p9)   ;;  %s854_s20 = sshll.u32 (!%p242_p9), %s1087_s28, 8  ;;  %s1023_s9 = smov (!%p242_p9), [#allocation2]  }
  0x12   : > { %863 = vmatpush3.bf16.msra.mxu1 (!%p242_p9), %v937_v25  ;;  %v940_v29 = vld [vmem:[%s1303_s3 + $0x18] sm:$0xff] (!%p242_p9)   ;;  %v941_v30 = vld [vmem:[%s1303_s3 + $0x20] sm:$0xff] (!%p242_p9)   ;;  %v942_v31 = vld [vmem:[%s1303_s3 + $0x28] sm:$0xff] (!%p242_p9)   ;;  %s1254_s29 = scalar_lea.hbm (!%p242_p9), %s1307_s7, %s854_s20 }
  0x13   : > { %413 = vmatpush1.bf16.msra.mxu0 (!%p242_p9), %v926_v2  ;;  %864 = vmatprep.subr.bf16.mxu1 (!%p242_p9), %v1019_v26  ;;  %v815_v32 = vld [vmem:[%s1302_s2] ss:$0 sm:$0xff] (!%p242_p9)  ;;  %v944_v52 = vld [vmem:[%s1305_s5 + $0x8] sm:$0xff] (!%p242_p9)   ;;  %v945_v53 = vld [vmem:[%s1305_s5 + $0x10] sm:$0xff] (!%p242_p9)  }
  0x14   : > { %414 = vmatprep.subr.bf16.mxu0 (!%p242_p9), %v1017_v1  ;;  %v943_v51 = vld [vmem:[%s1305_s5] sm:$0xff] (!%p242_p9)   ;;  %v946_v54 = vld [vmem:[%s1305_s5 + $0x18] sm:$0xff] (!%p242_p9)   ;;  %v948_v56 = vld [vmem:[%s1305_s5 + $0x28] sm:$0xff] (!%p242_p9)  }
  0x15   : > { %s1315_s13 = smov (!%p274_p10, %s812_s13), 3  ;;  %v947_v55 = vld [vmem:[%s1305_s5 + $0x20] sm:$0xff]   ;;  %v949_v57 = vld [vmem:[%s1305_s5 + $0x30] sm:$0xff]   ;;  %v950_v58 = vld [vmem:[%s1305_s5 + $0x38] sm:$0xff]  }
  0x16   : > { %s813_s18 = sshll.u32 %s1315_s13, 2  ;;  %865 = vmatpush3.bf16.msra.mxu1 %v938_v27  ;;  %v951_v59 = vld [vmem:[%s1305_s5 + $0x40] sm:$0xff]   ;;  %v952_v2 = vld [vmem:[%s1305_s5 + $0x48] sm:$0xff]   ;;  %s957_s13 = sshll.u32 %s1023_s9, 4  ;;  %s958_s13 = int_to_ptr.vmem [resolvable:$false] %s957_s13 }
  0x17   : > { %s277_s21 = scalar_lea.vmem %s1300_s0, %s813_s18  ;;  %415 = vmatpush1.bf16.msra.mxu0 %v927_v3  ;;  %866 = vmatprep.subr.bf16.mxu1 %v1019_v26  ;;  %v829_v60 = vld [vmem:[%s1304_s4] ss:$0 sm:$0xff] }
  0x18   : > { %v281_v4 = vld [vmem:[%s277_s21] sm:$0xf]  ;;  %v282_v5 = vld [vmem:[%s277_s21 + $0x4] sm:$0xf]  ;;  %416 = vmatprep.subr.bf16.mxu0 %v1017_v1 }
  0x19   : > { %v283_v6 = vmax.bf16 %v1017_v1, %v281_v4  ;;  %v284_v7 = vmax.bf16 %v1017_v1, %v282_v5 }
  0x1a   : > { %867 = vmatpush3.bf16.msra.mxu1 %v939_v28 }
  0x1b   : > { %v814_v8 = vcombine.low %v283_v6, %v284_v7  ;;  %417 = vmatpush1.bf16.msra.mxu0 %v928_v9  ;;  %868 = vmatprep.subr.bf16.mxu1 %v1019_v26 }
  0x1c   : > { %418 = vmatprep.subr.bf16.mxu0 %v1017_v1 }
  0x1d   : > { %v316_v10 = vshrl.u32 %v814_v8, 16  ;;  %v318_v11 = vshll.u32 %v814_v8, 16  ;;  %v324_v12 = vrot.slane %v814_v8, 1 }
  0x1e   : > { %869 = vmatpush3.bf16.msra.mxu1 %v940_v29 }
  0x1f   : > { %v320_v13 = vrot.slane %v318_v11, 1  ;;  %828 = vmatprep.mubr.msk.bf16.mxu0 %vm325_vm0, %v324_v12  ;;  %419 = vmatpush1.bf16.msra.mxu0 %v929_v14 }
  0x20   : > { %420 = vmatprep.subr.bf16.mxu0 %v1017_v1  ;;  %870 = vmatprep.subr.bf16.mxu1 %v1019_v26 }
  0x21   : > { %v321_v15 = vor.u32 %v320_v13, %v316_v10 }
  0x22   : > { %871 = vmatpush3.bf16.msra.mxu1 %v941_v30 }
  0x23   : > { %322 = vrot.lane.b32.xlu0 %v321_v15, %s1018_s16  ;;  %421 = vmatpush1.bf16.msra.mxu0 %v930_v16 }
  0x24   : > { %422 = vmatprep.subr.bf16.mxu0 %v1017_v1  ;;  %872 = vmatprep.subr.bf16.mxu1 %v1019_v26 }
  0x26   : > { %873 = vmatpush3.bf16.msra.mxu1 %v942_v31 }
  0x27   : > { %423 = vmatpush1.bf16.msra.mxu0 %v931_v17  ;;  %690 = vmatprep.subr.bf16.mxu1 %v1017_v1 }
  0x28   : > { %424 = vmatprep.subr.bf16.mxu0 %v1017_v1 }
  0x2b   : > { %425 = vmatpush1.bf16.msra.mxu0 %v932_v18 }
  0x2c   : > { %426 = vmatprep.subr.bf16.mxu0 %v1017_v1 }
  0x2f   : > { %427 = vmatpush1.bf16.msra.mxu0 %v933_v19 }
  0x30   : > { %428 = vmatprep.subr.bf16.mxu0 %v1017_v1 }
  0x33   : > { %429 = vmatpush1.bf16.msra.mxu0 %v934_v20 }
  0x34   : > { %430 = vmatprep.subr.bf16.mxu0 %v1017_v1 }
  0x37   : > { %431 = vmatpush1.bf16.msra.mxu0 %v935_v21 }
  0x38   : > { %432 = vmatprep.subr.bf16.mxu0 %v1017_v1 }
  0x3b   : > { %433 = vmatpush1.bf16.msra.mxu0 %v936_v22  ;;  %v837_v22 = vld [vmem:[%s1306_s6] ss:$0 sm:$0xff] }
  0x95   : > { %v323_v23 = vpop.permute.xlu0 %322 }
  0x96   : > { %v327_v24 = vsel %vm325_vm0, %v814_v8, %v323_v23 }
  0x97   : > { %443 = vmatmul.mubr.bf16.vlgmr.msra.gmra.mrb[0].mxu0 %v327_v24 }
 0x16a   : > { %v444_v33 = vpop.f32.mrb[0].mxu0 }
 0x16b   : > { %v445_v34 = vadd.f32 %v815_v32, %v444_v33  ;;  %v446_v35 = vpop.f32.mrb[1].mxu0 }
 0x16c   : > { %v447_v36 = vpop.f32.mrb[2].mxu0 }
 0x16d   : > { %v448_v37 = vadd.f32 %v815_v32, %v447_v36  ;;  %v449_v38 = vpop.f32.mrb[3].mxu0  ;;  %v451_v39 = vmax.f32 %v445_v34, 0.0 }
 0x16f   : > { %v452_v40 = vmax.f32 %v448_v37, 0.0 }
 0x171   : > { %v466_v41 = vpack.c.bf16 %v452_v40, %v451_v39 }
 0x173   : > { %v477_v42 = vrot.slane %v466_v41, 1  ;;  %v470_v43 = vshll.u32 %v466_v41, 16  ;;  %v468_v44 = vshrl.u32 %v466_v41, 16 }
 0x175   : > { %478 = vrot.lane.b32.xlu1 %v477_v42, %s1018_s16  ;;  %v472_v45 = vrot.slane %v470_v43, 1 }
 0x177   : > { %v473_v46 = vor.u32 %v472_v45, %v468_v44 }
 0x179   : > { %474 = vrot.lane.b32.xlu0 %v473_v46, %s1021_s17 }
 0x1e7   : > { %v479_v48 = vpop.permute.xlu1 %478 }
 0x1eb   : > { %v475_v47 = vpop.permute.xlu0 %474 }
 0x1ec   : > { %v482_v49 = vsel %vm480_vm2, %v466_v41, %v475_v47 }
 0x1ed   : > { %v484_v50 = vsel %vm325_vm0, %v482_v49, %v479_v48 }
 0x1ee   : > { %875 = vmatmul.mubr.msk.bf16.vlgmr.msra.gmra.mrb[0].mxu1 %vm527_vm3, %v484_v50 }
 0x1ef   : > { %691 = vmatpush1.bf16.msra.mxu1 %v943_v51 }
 0x1f0   : > { %692 = vmatprep.subr.bf16.mxu1 %v1017_v1 }
 0x1f3   : > { %693 = vmatpush1.bf16.msra.mxu1 %v944_v52 }
 0x1f4   : > { %694 = vmatprep.subr.bf16.mxu1 %v1017_v1 }
 0x1f7   : > { %695 = vmatpush1.bf16.msra.mxu1 %v945_v53 }
 0x1f8   : > { %696 = vmatprep.subr.bf16.mxu1 %v1017_v1 }
 0x1fb   : > { %697 = vmatpush1.bf16.msra.mxu1 %v946_v54 }
 0x1fc   : > { %698 = vmatprep.subr.bf16.mxu1 %v1017_v1 }
 0x1ff   : > { %699 = vmatpush1.bf16.msra.mxu1 %v947_v55 }
 0x200   : > { %700 = vmatprep.subr.bf16.mxu1 %v1017_v1 }
 0x203   : > { %701 = vmatpush1.bf16.msra.mxu1 %v948_v56 }
 0x204   : > { %702 = vmatprep.subr.bf16.mxu1 %v1017_v1 }
 0x207   : > { %703 = vmatpush1.bf16.msra.mxu1 %v949_v57 }
 0x208   : > { %704 = vmatprep.subr.bf16.mxu1 %v1017_v1 }
 0x20b   : > { %705 = vmatpush1.bf16.msra.mxu1 %v950_v58 }
 0x20c   : > { %706 = vmatprep.subr.bf16.mxu1 %v1017_v1 }
 0x20f   : > { %707 = vmatpush1.bf16.msra.mxu1 %v951_v59 }
 0x210   : > { %708 = vmatprep.subr.bf16.mxu1 %v1017_v1 }
 0x213   : > { %709 = vmatpush1.bf16.msra.mxu1 %v952_v2 }
 0x2c1   : > { %v564_v61 = vpop.f32.mrb[0].mxu1 }
 0x2c2   : > { %v565_v62 = vadd.f32 %v829_v60, %v564_v61  ;;  %v876_v63 = vpop.f32.mrb[1].mxu1 }
 0x2c3   : > { %v567_v0 = vpop.f32.mrb[2].mxu1 }
 0x2c4   : > { %v568_v3 = vadd.f32 %v829_v60, %v567_v0  ;;  %v877_v4 = vpop.f32.mrb[3].mxu1  ;;  %v571_v5 = vmax.f32 %v565_v62, 0.0 }
 0x2c6   : > { %v572_v6 = vmax.f32 %v568_v3, 0.0 }
 0x2c8   : > { %v594_v7 = vpack.c.bf16 %v572_v6, %v571_v5 }
 0x2ca   : > { %v613_v8 = vrot.slane %v594_v7, 2  ;;  %v605_v9 = vrot.slane %v594_v7, 1  ;;  %v596_v10 = vshrl.u32 %v594_v7, 16  ;;  %v598_v11 = vshll.u32 %v594_v7, 16 }
 0x2cc   : > { %848 = vmatprep.mubr.msk.bf16.mxu1 %vm480_vm2, %v613_v8  ;;  %606 = vrot.lane.b32.xlu0 %v605_v9, %s1018_s16  ;;  %v600_v1 = vrot.slane %v598_v11, 1  ;;  %v608_v13 = vrot.slane %v596_v10, 1  ;;  %v609_v14 = vrot.slane %v598_v11, 2  ;;  %s270_s16 = sand.u32 1, %s1007_s25  }
 0x2cd   : > { %s811_s15 = sshll.u32 %s270_s16, 4  ;;  %s1259_s28 = scalar_lea.sflag [#allocation3], %s270_s16 }
 0x2ce   : > { %v601_v12 = vor.u32 %v600_v1, %v596_v10  ;;  %v610_v15 = vor.u32 %v609_v14, %v608_v13  ;;  %s272_s18 = scalar_lea.vmem [#allocation2], %s811_s15 }
 0x2cf   : > { %s745_s19 = sshll.u32 %s272_s18, 4  ;;  %s1256_s19 = int_to_ptr.vmem [resolvable:$true] %s745_s19 }
 0x2d0   : > { %602 = vrot.lane.b32.xlu1 %v601_v12, %s1021_s17  ;;  %s953_s8 = scalar_lea.vmem %s1256_s19, 256  ;;  %p960_p0 = scmp.lt.s32.totalorder %s1256_s19, %s958_s13 }
 0x2d1   : > { %p954_p11 = scmp.ne.s32.totalorder %s1256_s19, %s953_s8 }
 0x2d3   : > { %p955_p12 = pnand %p954_p11, %p1104_p5 }
 0x2d4   : > { %611 = vrot.lane.b32.xlu1 %v610_v15, %s1022_s14  ;;  %s959_s14 = scalar_lea.vmem %s958_s13, 512 }
 0x2d5   : > { %p956_p13 = pneg %p955_p12  ;;  %p961_p1 = scmp.lt.s32.totalorder %s959_s14, %s953_s8 }
 0x2d7   : > { %p962_p2 = por %p961_p1, %p960_p0 }
 0x2d9   : > { %p963_p3 = pnand %p962_p2, %p956_p13 }
 0x33e   : > { %v607_v18 = vpop.permute.xlu0 %606 }
 0x342   : > { %v603_v16 = vpop.permute.xlu1 %602 }
 0x343   : > { %v615_v17 = vsel %vm480_vm2, %v594_v7, %v603_v16 }
 0x344   : > { %v617_v19 = vsel %vm325_vm0, %v615_v17, %v607_v18 }
 0x346   : > { %v612_v20 = vpop.permute.xlu1 %611 }
 0x347   : > { %v619_v21 = vsel %vm527_vm3, %v617_v19, %v612_v20 }
 0x348   : > { %723 = vmatmul.mubr.bf16.vlgmr.msra.gmra.mrb[4].mxu1 %v619_v21 }
 0x41b   : > { %v724_v23 = vpop.f32.mrb[4].mxu1 }
 0x41c   : > { %v725_v24 = vadd.f32 %v837_v22, %v724_v23  ;;  %v726_v25 = vpop.f32.mrb[5].mxu1 }
 0x41d   : > { %v727_v26 = vpop.f32.mrb[6].mxu1 }
 0x41e   : > { %730 = vst.msk [vmem:[%s272_s18] sm:$0xff] %vm480_vm2, %v725_v24  ;;  %v728_v27 = vpop.f32.mrb[7].mxu1 }
 0x41f   : > { %966 = shalt.err (!%p963_p3)
}
 0x420   : > { %s967_s16 = scalar_lea.hbm %s1254_s29, 256  ;;  %s971_s20 = scalar_lea.hbm %s1307_s7, 512 }
 0x421   : > { %p968_p4 = scmp.ne.s32.totalorder %s1254_s29, %s967_s16  ;;  %p972_p9 = scmp.lt.u32.totalorder %s1254_s29, %s1307_s7 }
 0x422   : > { %p973_p10 = scmp.lt.u32.totalorder %s971_s20, %s967_s16  ;;  %p975_p12 = scmp.lt.u32.totalorder %s967_s16, %s1254_s29 }
 0x423   : > { %p969_p7 = pnand %p968_p4, %p1104_p5 }
 0x424   : > { %p974_p11 = por %p973_p10, %p972_p9 }
 0x425   : > { %p970_p8 = pneg %p969_p7 }
 0x426   : > { %p976_p13 = por %p975_p12, %p974_p11 }
 0x428   : > { %p977_p0 = pnand %p976_p13, %p970_p8 }
 0x42a   : > { %980 = shalt.err (!%p977_p0)
}
 0x42b   : > { %s1024_s22 = smov 128   ;;  %s1025_s23 = smov 8  }
 0x42c   : > { %878 = dma.vmem_to_hbm [thread:$0]  (%p1104_p5), %s1256_s19, 256, %s1254_s29, %s1259_s28, %s1024_s22, %s1024_s22, %s1025_s23  }
 0x42d PF: > { %p884_p1 = scmp.ge.s32.totalorder %s1015_s27, 2  ;;  %s760_s8 = sand.u32 1, %s1003_s24  }
 0x42e   : > { %s761_s9 = scalar_lea.sflag [#allocation3], %s760_s8 }
 0x42f   : > { %p881_p2 = pnand %p884_p1, %p1108_p6 }
 0x431   : > { %998 = dma.done.wait (!%p881_p2), %s761_s9, 256  }
 0x432   : > { %1000 = vsyncadd (!%p881_p2), %s761_s9, 4294967040  ;;  %p17_p3 = scmp.ge.s32.totalorder %s1091_s30, 4   ;;  %s1310_s24 = smov %s1007_s25 }
 0x433   : > { %s1311_s25 = smov %s1011_s26  ;;  %s1312_s26 = smov %s1102_s10 }
 0x434   : > { %s1313_s27 = smov %s1091_s30  ;;  %19 = sbr.rel (!%p17_p3) target bundleno = 3 (0x3), region = 83 }
 0x43b   :  { %766 = vsyncpa [#allocation3], 1 }
 0x43c   :  { %768 = vsyncpa [#allocation3 + $0x1], 1 }

</bundles_post_ra>
